<compile_context>
chip_gen: v7x
topology: tpu7x:2x2x1
jax: 0.10.0
libtpu: 0.0.40
codegen_flags: <defaults>
</compile_context>

<pallas_src>
import functools

import jax
import jax.numpy as jnp
from jax import lax
from jax.experimental import pallas as pl
from jax.experimental.pallas import tpu as pltpu


# ---------------------------------------------------------------------------
# Kernels
# ---------------------------------------------------------------------------

def _avg_pool_fused_kernel(m_ref, x_ref, o_ref):
    """Fused path: one lane-dense MXU matmul per grid step.

    m_ref : (H*W, OH*OW)  pre-scaled pooling matrix (resident constant)
    x_ref : (tb, H*W)     streamed input block
    o_ref : (tb, OH*OW)   output block (lane-dense)
    """
    m = m_ref[...]
    x = x_ref[...].astype(m.dtype)
    o_ref[...] = jnp.dot(x, m, preferred_element_type=jnp.float32).astype(o_ref.dtype)


def _avg_pool_separable_kernel(a_h_ref, a_wT_ref, x_ref, o_ref):
    """Separable path: out_b = A_h @ (x_b @ A_w^T) for each slice b.

    a_h_ref : (OH, H)  rows pre-scaled by 1/valid_row_count (resident)
    a_wT_ref: (W, OW)  cols pre-scaled by 1/valid_col_count (resident)
    x_ref   : (tb, H, W)
    o_ref   : (tb, OH, OW)
    """
    a_h = a_h_ref[...]
    a_wT = a_wT_ref[...]
    OH, H = a_h.shape
    W, OW = a_wT.shape
    xv = x_ref[...].astype(a_wT.dtype)                     # (tb, H, W)
    tb = xv.shape[0]

    sub = 16 if a_wT.dtype == jnp.bfloat16 else 8
    if H % sub == 0:
        # Horizontal pass batched over all tb slices: ONE big MXU matmul
        # (M = tb*H gives good MXU occupancy).
        t = jnp.dot(xv.reshape(tb * H, W), a_wT,
                    preferred_element_type=jnp.float32)    # (tb*H, OW)
        t = t.astype(a_h.dtype).reshape(tb, H, OW)
        for b in range(tb):                                 # small vertical matmuls
            o_ref[b] = jnp.dot(a_h, t[b],
                               preferred_element_type=jnp.float32).astype(o_ref.dtype)
    else:
        # H not sublane-aligned: avoid the (tb,H,W)->(tb*H,W) relayout.
        for b in range(tb):
            tmp = jnp.dot(xv[b], a_wT, preferred_element_type=jnp.float32)
            o_ref[b] = jnp.dot(a_h, tmp.astype(a_h.dtype),
                               preferred_element_type=jnp.float32).astype(o_ref.dtype)


# ---------------------------------------------------------------------------
# Wrapper helpers
# ---------------------------------------------------------------------------

def _pool_matrix(in_size, out_size, k, s, p):
    """(out, in) window-selection matrix with 1/valid-count folded per row."""
    i = jnp.arange(in_size, dtype=jnp.int32)[None, :]
    o = jnp.arange(out_size, dtype=jnp.int32)[:, None]
    start = o * s - p
    sel = ((i >= start) & (i < start + k)).astype(jnp.float32)      # (out, in)
    count = jnp.maximum(jnp.sum(sel, axis=1, keepdims=True), 1.0)
    return sel / count


@functools.lru_cache(maxsize=None)
def _vmem_budget():
    """Generation-aware (streamed-block budget, compiler vmem limit) in bytes."""
    try:
        cap = int(pltpu.get_tpu_info().vmem_capacity_bytes)
    except Exception:
        cap = 64 * 1024 * 1024                      # conservative (v7x-sized)
    budget = min(20 * 1024 * 1024, cap // 4)        # v5e/v6e: 20 MiB, v7x: 16 MiB
    limit = int(min(cap * 3 // 4, 100 * 1024 * 1024))
    return budget, limit


def _pick_batch_tile(bc, per_slice_bytes, const_bytes, budget,
                     sublane=None, max_tb=None):
    """Number of (batch*channel) slices processed per grid step."""
    avail = max(budget - const_bytes, per_slice_bytes)
    cap = max(1, int(avail // per_slice_bytes))
    if max_tb is not None:
        cap = min(cap, max_tb)
    cap = min(cap, bc)

    small = bc < (4 * sublane if sublane is not None else 4)
    if cap >= bc and small:
        return bc                                   # tiny problem: single step

    # Prefer >=4 grid steps (>=2 per v7x TensorCore) so step i+1's DMA can
    # overlap step i's compute; never exceed the VMEM-implied cap.
    tb = min(cap, -(-bc // 4))
    if sublane is not None:
        # Second-to-last block dim must be a multiple of the sublane tile
        # (the full-dim case is covered by the `small` branch above).
        tb = (tb // sublane) * sublane if tb >= sublane else min(sublane, bc)
    return max(1, tb)


# ---------------------------------------------------------------------------
# Public entry point
# ---------------------------------------------------------------------------

@functools.partial(jax.jit, static_argnames=("kernel_size", "stride", "padding"))
def avg_pool2d(x, *, kernel_size, stride=None, padding=0):
    """Average pooling (NCHW); divisor = number of valid (in-bounds) elements."""
    if stride is None:
        stride = kernel_size
    B, C, H, W = x.shape
    OH = (H + 2 * padding - kernel_size) // stride + 1
    OW = (W + 2 * padding - kernel_size) // stride + 1
    BC, HW, OHW = B * C, H * W, OH * OW

    # bf16 inputs keep bf16 constants (native MXU rate, no upcast of the
    # streamed block); otherwise f32.  Accumulation is always f32.
    cdtype = jnp.bfloat16 if x.dtype == jnp.bfloat16 else jnp.float32
    csize = jnp.dtype(cdtype).itemsize
    isize = x.dtype.itemsize
    budget, vmem_limit = _vmem_budget()

    a_h32 = _pool_matrix(H, OH, kernel_size, stride, padding)           # (OH, H)
    a_w32 = _pool_matrix(W, OW, kernel_size, stride, padding)           # (OW, W)

    compiler_params = pltpu.CompilerParams(
        dimension_semantics=("parallel",),
        vmem_limit_bytes=vmem_limit,
    )

    use_fused = (HW <= 4096) and (HW * OHW * csize <= 2 * 1024 * 1024)

    if use_fused:
        # One lane-dense matmul per block: (tb, H*W) @ (H*W, OH*OW).
        m = jnp.kron(a_h32.T, a_w32.T).astype(cdtype)                   # (HW, OHW)
        const_bytes = 2 * HW * OHW * csize                              # 2x buffered
        per_slice = (2 * HW * isize +       # streamed input (double-buffered)
                     2 * OHW * isize +      # output (double-buffered)
                     HW * csize + OHW * 4)  # in-kernel temporaries
        tb = _pick_batch_tile(BC, per_slice, const_bytes, budget, sublane=8)

        out_flat = pl.pallas_call(
            _avg_pool_fused_kernel,
            out_shape=jax.ShapeDtypeStruct((BC, OHW), x.dtype),
            grid_spec=pltpu.PrefetchScalarGridSpec(
                num_scalar_prefetch=0,
                grid=(pl.cdiv(BC, tb),),
                in_specs=[
                    pl.BlockSpec((HW, OHW), lambda i: (0, 0)),          # resident
                    pl.BlockSpec((tb, HW), lambda i: (i, 0)),
                ],
                out_specs=pl.BlockSpec((tb, OHW), lambda i: (i, 0)),
            ),
            compiler_params=compiler_params,
        )(m, x.reshape(BC, HW))
        return out_flat.reshape(B, C, OH, OW)

    # Separable path for large spatial extents.
    a_h = a_h32.astype(cdtype)                                          # (OH, H)
    a_wT = a_w32.T.astype(cdtype)                                       # (W, OW)
    const_bytes = 2 * (OH * H + W * OW) * csize
    per_slice = (2 * HW * isize + 2 * OHW * isize +
                 HW * csize + H * OW * 4 + OHW * 4)
    tb = _pick_batch_tile(BC, per_slice, const_bytes, budget, max_tb=32)

    out = pl.pallas_call(
        _avg_pool_separable_kernel,
        out_shape=jax.ShapeDtypeStruct((BC, OH, OW), x.dtype),
        grid_spec=pltpu.PrefetchScalarGridSpec(
            num_scalar_prefetch=0,
            grid=(pl.cdiv(BC, tb),),
            in_specs=[
                pl.BlockSpec((OH, H), lambda i: (0, 0)),                # resident
                pl.BlockSpec((W, OW), lambda i: (0, 0)),                # resident
                pl.BlockSpec((tb, H, W), lambda i: (i, 0, 0)),
            ],
            out_specs=pl.BlockSpec((tb, OH, OW), lambda i: (i, 0, 0)),
        ),
        compiler_params=compiler_params,
    )(a_h, a_wT, x.reshape(BC, H, W))
    return out.reshape(B, C, OH, OW)


def _reference_avg_pool(x, kernel_size, stride, padding):
    """Pure-JAX reference: window sum / count of in-bounds elements."""
    ones = jnp.ones_like(x)
    dims = (1, 1, kernel_size, kernel_size)
    strides = (1, 1, stride, stride)
    pads = ((0, 0), (0, 0), (padding, padding), (padding, padding))
    s = lax.reduce_window(x, 0.0, lax.add, dims, strides, pads)
    c = lax.reduce_window(ones, 0.0, lax.add, dims, strides, pads)
    return s / c


class ModelNew:
    """JAX/Pallas equivalent of the PyTorch ModelNew (custom avg pool)."""

    def __init__(self, kernel_size: int, stride: int = None, padding: int = 0):
        if stride is None:
            stride = kernel_size
        self.kernel_size = kernel_size
        self.stride = stride
        self.padding = padding

    def __call__(self, x):
        return avg_pool2d(x, kernel_size=self.kernel_size,
                          stride=self.stride, padding=self.padding)


if __name__ == "__main__":
    key = jax.random.PRNGKey(0)
    B, C, H, W = 2, 4, 16, 16
    x = jax.random.normal(key, (B, C, H, W), dtype=jnp.float32)

    kernel_size, stride, padding = 3, 2, 1
    model = ModelNew(kernel_size, stride, padding)

    out = jax.block_until_ready(model(x))

    ref = _reference_avg_pool(x, kernel_size, stride, padding)
    assert out.shape == ref.shape, (out.shape, ref.shape)
    assert jnp.allclose(out, ref, atol=1e-5, rtol=1e-5), "mismatch vs reference"

    print("KERNEL_OK")
</pallas_src>

<mosaic_0001>
module attributes {stable_mosaic.version = 11 : i64} {
  func.func @_avg_pool_fused_kernel(%arg0: i32, %arg1: memref<256x64xf32, #tpu.memory_space<vmem>>, %arg2: memref<8x256xf32, #tpu.memory_space<vmem>>, %arg3: memref<8x64xf32, #tpu.memory_space<vmem>>) attributes {dimension_semantics = [#tpu.dimension_semantics<parallel>], iteration_bounds = array<i64: 1>, scalar_prefetch = 0 : i64, scratch_operands = 0 : i64, tpu.core_type = #tpu.core_type<tc>, window_params = [{pipeline_mode = #tpu.pipeline_mode<synchronous>, transform_indices = @transform_0, window_bounds = array<i64: 256, 64>}, {transform_indices = @transform_1, window_bounds = array<i64: 8, 256>}, {transform_indices = @transform_2, window_bounds = array<i64: 8, 64>}]} {
    %c0 = arith.constant 0 : index
    %c0_0 = arith.constant 0 : index
    %0 = vector.load %arg1[%c0, %c0_0] : memref<256x64xf32, #tpu.memory_space<vmem>>, vector<256x64xf32>
    %c0_1 = arith.constant 0 : index
    %c0_2 = arith.constant 0 : index
    %1 = vector.load %arg2[%c0_1, %c0_2] : memref<8x256xf32, #tpu.memory_space<vmem>>, vector<8x256xf32>
    %cst = arith.constant dense<0.000000e+00> : vector<8x64xf32>
    %2 = tpu.matmul %1, %0, %cst {dimension_numbers = #tpu.dot_dimension_numbers<[1], [0], [0], [1], [0, 0, 1, 1], [], []>} : vector<8x256xf32>, vector<256x64xf32>, vector<8x64xf32> -> vector<8x64xf32>
    %c0_3 = arith.constant 0 : index
    %c0_4 = arith.constant 0 : index
    %3 = vector.load %arg3[%c0_3, %c0_4] : memref<8x64xf32, #tpu.memory_space<vmem>>, vector<8x64xf32>
    tpu.vector_store %arg3[%c0_3, %c0_4], %2 {strides = array<i32>} : memref<8x64xf32, #tpu.memory_space<vmem>>, vector<8x64xf32>,
    return
  }
  func.func @transform_0(%arg0: i32) -> (i32, i32) {
    %c0_i32 = arith.constant 0 : i32
    %c0_i32_0 = arith.constant 0 : i32
    %c0_i32_1 = arith.constant 0 : i32
    return %c0_i32, %c0_i32_0 : i32, i32
  }
  func.func @transform_1(%arg0: i32) -> (i32, i32) {
    %c0_i32 = arith.constant 0 : i32
    %c0_i32_0 = arith.constant 0 : i32
    return %arg0, %c0_i32 : i32, i32
  }
  func.func @transform_2(%arg0: i32) -> (i32, i32) {
    %c0_i32 = arith.constant 0 : i32
    %c0_i32_0 = arith.constant 0 : i32
    return %arg0, %c0_i32 : i32, i32
  }
}

</mosaic_0001>

<bundles_post_ra>
// kernel: avg_pool2d.1
= control target key start
LH: loop header
LB: loop body
LE: loop exit
PB: predicated region body
PF: predicated region fallthrough
CT: control target
= control target key end

     0   :  { %vm115_vm0 = vcmask 523264   ;;  %s308_s0 = inlined_call_operand.vmem [shape: f32[256,64], index: 0, kind: input, shape index: {}]   ;;  %s309_s1 = inlined_call_operand.vmem [shape: f32[8,256], index: 1, kind: input, shape index: {}]   ;;  %s310_s2 = inlined_call_operand.vmem [shape: f32[8,64], index: 2, kind: output, shape index: {}]  }
   0x1   :  { %v27_v0 = vld [vmem:[%s308_s0 + $0x80] sm:$0xff]  ;;  %v28_v1 = vld [vmem:[%s308_s0 + $0x88] sm:$0xff]  ;;  %v29_v5 = vld [vmem:[%s308_s0 + $0x90] sm:$0xff] }
   0x2   :  { %v11_v2 = vld [vmem:[%s308_s0] sm:$0xff]  ;;  %v156_v3 = vpack.c.bf16 %v28_v1, %v27_v0  ;;  %v12_v4 = vld [vmem:[%s308_s0 + $0x8] sm:$0xff]  ;;  %v30_v6 = vld [vmem:[%s308_s0 + $0x98] sm:$0xff] }
   0x3   :  { %v158_v7 = vpack.c.bf16 %v12_v4, %v11_v2  ;;  %v160_v8 = vpack.c.bf16 %v30_v6, %v29_v5  ;;  %v13_v9 = vld [vmem:[%s308_s0 + $0x10] sm:$0xff]  ;;  %v14_v10 = vld [vmem:[%s308_s0 + $0x18] sm:$0xff]  ;;  %v31_v11 = vld [vmem:[%s308_s0 + $0xa0] sm:$0xff] }
   0x4   :  { %157 = vmatprep.subr.bf16.mxu0 %v156_v3  ;;  %v32_v12 = vld [vmem:[%s308_s0 + $0xa8] sm:$0xff]  ;;  %v162_v13 = vpack.c.bf16 %v14_v10, %v13_v9  ;;  %v15_v15 = vld [vmem:[%s308_s0 + $0x20] sm:$0xff]  ;;  %v33_v17 = vld [vmem:[%s308_s0 + $0xb0] sm:$0xff] }
   0x5   :  { %159 = vmatpush3.bf16.msra.mxu0 %v158_v7  ;;  %v164_v14 = vpack.c.bf16 %v32_v12, %v31_v11  ;;  %v16_v16 = vld [vmem:[%s308_s0 + $0x28] sm:$0xff]  ;;  %v34_v18 = vld [vmem:[%s308_s0 + $0xb8] sm:$0xff]  ;;  %v17_v21 = vld [vmem:[%s308_s0 + $0x30] sm:$0xff] }
   0x6   :  { %161 = vmatprep.subr.bf16.mxu0 %v160_v8  ;;  %v166_v19 = vpack.c.bf16 %v16_v16, %v15_v15  ;;  %v168_v20 = vpack.c.bf16 %v34_v18, %v33_v17  ;;  %v18_v22 = vld [vmem:[%s308_s0 + $0x38] sm:$0xff]  ;;  %v35_v23 = vld [vmem:[%s308_s0 + $0xc0] sm:$0xff]  ;;  %v36_v24 = vld [vmem:[%s308_s0 + $0xc8] sm:$0xff] }
   0x7   :  { %v44_v25 = vld [vmem:[%s309_s1 + $0x8] sm:$0xff]  ;;  %v170_v26 = vpack.c.bf16 %v18_v22, %v17_v21  ;;  %v172_v27 = vpack.c.bf16 %v36_v24, %v35_v23  ;;  %v19_v28 = vld [vmem:[%s308_s0 + $0x40] sm:$0xff]  ;;  %v37_v30 = vld [vmem:[%s308_s0 + $0xd0] sm:$0xff] }
   0x8   :  { %109 = vmatprep.mubr.f32.mxu0 %v44_v25  ;;  %v20_v29 = vld [vmem:[%s308_s0 + $0x48] sm:$0xff]  ;;  %v38_v31 = vld [vmem:[%s308_s0 + $0xd8] sm:$0xff]  ;;  %v21_v34 = vld [vmem:[%s308_s0 + $0x50] sm:$0xff] }
   0x9   :  { %163 = vmatpush3.bf16.msra.mxu0 %v162_v13  ;;  %v174_v32 = vpack.c.bf16 %v20_v29, %v19_v28  ;;  %v176_v33 = vpack.c.bf16 %v38_v31, %v37_v30  ;;  %v22_v35 = vld [vmem:[%s308_s0 + $0x58] sm:$0xff]  ;;  %v39_v36 = vld [vmem:[%s308_s0 + $0xe0] sm:$0xff]  ;;  %v40_v37 = vld [vmem:[%s308_s0 + $0xe8] sm:$0xff] }
   0xa   :  { %165 = vmatprep.subr.bf16.mxu0 %v164_v14  ;;  %v178_v38 = vpack.c.bf16 %v22_v35, %v21_v34  ;;  %v180_v39 = vpack.c.bf16 %v40_v37, %v39_v36  ;;  %v23_v40 = vld [vmem:[%s308_s0 + $0x60] sm:$0xff]  ;;  %v24_v41 = vld [vmem:[%s308_s0 + $0x68] sm:$0xff]  ;;  %v41_v42 = vld [vmem:[%s308_s0 + $0xf0] sm:$0xff] }
   0xb   :  { %v42_v43 = vld [vmem:[%s308_s0 + $0xf8] sm:$0xff]  ;;  %v182_v44 = vpack.c.bf16 %v24_v41, %v23_v40  ;;  %v25_v46 = vld [vmem:[%s308_s0 + $0x70] sm:$0xff]  ;;  %v43_v49 = vld [vmem:[%s309_s1] sm:$0xff] }
   0xc   :  { %v184_v45 = vpack.c.bf16 %v42_v43, %v41_v42  ;;  %v26_v47 = vld [vmem:[%s308_s0 + $0x78] sm:$0xff] }
   0xd   :  { %167 = vmatpush3.bf16.msra.mxu0 %v166_v19  ;;  %v186_v48 = vpack.c.bf16 %v26_v47, %v25_v46 }
   0xe   :  { %169 = vmatprep.subr.bf16.mxu0 %v168_v20 }
  0x11   :  { %171 = vmatpush3.bf16.msra.mxu0 %v170_v26 }
  0x12   :  { %173 = vmatprep.subr.bf16.mxu0 %v172_v27 }
  0x15   :  { %175 = vmatpush3.bf16.msra.mxu0 %v174_v32 }
  0x16   :  { %177 = vmatprep.subr.bf16.mxu0 %v176_v33 }
  0x19   :  { %179 = vmatpush3.bf16.msra.mxu0 %v178_v38 }
  0x1a   :  { %181 = vmatprep.subr.bf16.mxu0 %v180_v39 }
  0x1d   :  { %183 = vmatpush3.bf16.msra.mxu0 %v182_v44 }
  0x1e   :  { %185 = vmatprep.subr.bf16.mxu0 %v184_v45 }
  0x21   :  { %187 = vmatpush3.bf16.msra.mxu0 %v186_v48 }
  0x24   :  { %110 = vmatmul.mubr.f32.vlgmr.msra.gmra.mrb[0].mxu0 %v43_v49 }
  0xf7   :  { %v153_v50 = vpop.f32.mrb[0].mxu0 }
  0xf8   :  { %v154_v51 = vpop.f32.mrb[1].mxu0 }
  0xf9   :  { %v155_v52 = vadd.f32 %v154_v51, %v153_v50 }
  0xfb   :  { %116 = vst.msk [vmem:[%s310_s2] sm:$0xff] %vm115_vm0, %v155_v52 }

</bundles_post_ra>
